<compile_context>
chip_gen: v5e
topology: v5e:2x2
jax: 0.10.0
libtpu: 0.0.40
codegen_flags: <defaults>
</compile_context>

<pallas_src>
import jax
import jax.numpy as jnp
import numpy as np
from jax.experimental import pallas as pl
from jax.experimental.pallas import tpu as pltpu


def _round_up(n, m):
    return (n + m - 1) // m * m


def _choose_tb(batch, tb):
    """Pick a lane tile (multiple of 128); keep >=2 grid steps for large batches."""
    tb = max(128, _round_up(tb, 128))
    b_up = _round_up(batch, 128)
    if b_up >= 256:
        # Largest multiple of 128 that is <= b_up / 2  -> guarantees >= 2 grid
        # steps so v7x's two TensorCores both get work.
        half = (b_up // 256) * 128
        tb = min(tb, half)
    else:
        tb = min(tb, b_up)
    return tb


def _qnet_kernel(x_ref, w1_ref, b1_ref, w2_ref, b2_ref, w3_ref, b3_ref, out_ref):
    # x tile: (in_dim, TB) bf16 (features on sublanes, batch on lanes).
    # Weights: (out, in) bf16.  Biases: (out, 1) f32 (lane-broadcast).
    x = x_ref[...]

    # fc1 + relu  (bf16 MXU inputs, f32 accumulation / elementwise)
    h1 = jnp.dot(w1_ref[...], x, preferred_element_type=jnp.float32)
    h1 = jnp.maximum(h1 + b1_ref[...], 0.0)

    # fc2 + relu
    h2 = jnp.dot(w2_ref[...], h1.astype(jnp.bfloat16),
                 preferred_element_type=jnp.float32)
    h2 = jnp.maximum(h2 + b2_ref[...], 0.0)

    # fc3 (no activation); output rows padded to 8 sublanes -> dense store.
    q = jnp.dot(w3_ref[...], h2.astype(jnp.bfloat16),
                preferred_element_type=jnp.float32)
    out_ref[...] = q + b3_ref[...]


def qnetwork_forward(x, params, num_actions, *, tb=4096):
    """x: (B, *input_shape).  Returns (B, num_actions) f32 Q-values."""
    w1, b1, w2, b2, w3p, b3p = params
    B = x.shape[0]

    # Glue: flatten like x.view(B, -1), cast to bf16 once (halves x DMA), and
    # transpose to feature-major (in_dim, B) so batch lands on the lane axis.
    x_t = x.reshape(B, -1).astype(jnp.bfloat16).T
    in_dim = x_t.shape[0]
    n_out_pad = w3p.shape[0]          # 8 (sublane-padded fc3 rows)

    TB = _choose_tb(B, tb)
    B_pad = _round_up(B, TB)
    if B_pad != B:
        x_t = jnp.pad(x_t, ((0, 0), (0, B_pad - B)))

    # Weights/biases: constant index_map -> DMA'd once, VMEM-resident for the
    # whole grid.  Activations/outputs: streamed per batch (lane) tile.
    resident = lambda a: pl.BlockSpec(a.shape, lambda i: (0,) * a.ndim)

    out = pl.pallas_call(
        _qnet_kernel,
        out_shape=jax.ShapeDtypeStruct((n_out_pad, B_pad), jnp.float32),
        grid=(B_pad // TB,),
        in_specs=[
            pl.BlockSpec((in_dim, TB), lambda i: (0, i)),
            resident(w1), resident(b1),
            resident(w2), resident(b2),
            resident(w3p), resident(b3p),
        ],
        out_specs=pl.BlockSpec((n_out_pad, TB), lambda i: (0, i)),
        compiler_params=pltpu.CompilerParams(
            dimension_semantics=("parallel",)),
    )(x_t, w1, b1, w2, b2, w3p, b3p)

    # Slice off sublane padding / batch padding, return batch-major Q-values.
    return out[:num_actions, :B].T


def init_params(key, input_shape, num_actions, hidden=128, out_pad=8):
    """Kaiming-uniform-ish init (like torch default).

    Weights stored as bf16 (out_features, in_features) — same orientation as
    torch.nn.Linear.  Biases are f32 (out_features, 1) columns (lane-broadcast
    in-kernel).  fc3 weight/bias zero-padded to `out_pad` output rows so the
    kernel's output block is a clean (8, TB) sublane tile.
    """
    in_dim = int(np.prod(input_shape))
    dims = [(in_dim, hidden), (hidden, hidden), (hidden, num_actions)]
    params = []
    for li, (fan_in, fan_out) in enumerate(dims):
        key, kw, kb = jax.random.split(key, 3)
        bound = 1.0 / np.sqrt(fan_in)
        w = jax.random.uniform(kw, (fan_out, fan_in), jnp.float32, -bound, bound)
        b = jax.random.uniform(kb, (fan_out, 1), jnp.float32, -bound, bound)
        if li == len(dims) - 1 and fan_out < out_pad:
            w = jnp.pad(w, ((0, out_pad - fan_out), (0, 0)))
            b = jnp.pad(b, ((0, out_pad - fan_out), (0, 0)))
        params += [w.astype(jnp.bfloat16), b.astype(jnp.float32)]
    return tuple(params)


def reference_forward(x, params, num_actions):
    """Pure-JAX reference of the same (bf16-weight, f32-accum) math."""
    w1, b1, w2, b2, w3, b3 = params
    h = x.reshape(x.shape[0], -1).astype(jnp.bfloat16)
    h = jnp.maximum(
        jnp.dot(h, w1.T, preferred_element_type=jnp.float32) + b1.T, 0.0)
    h = jnp.maximum(
        jnp.dot(h.astype(jnp.bfloat16), w2.T,
                preferred_element_type=jnp.float32) + b2.T, 0.0)
    q = jnp.dot(h.astype(jnp.bfloat16), w3.T,
                preferred_element_type=jnp.float32) + b3.T
    return q[:, :num_actions]


if __name__ == "__main__":
    # LunarLander-v2: observation dim 8, 4 discrete actions.
    input_shape = (8,)
    num_actions = 4

    params = init_params(jax.random.PRNGKey(0), input_shape, num_actions)

    # Small single-tile batch.
    key = jax.random.PRNGKey(0)
    key, kx = jax.random.split(key)
    x = jax.random.normal(kx, (8,) + input_shape, dtype=jnp.float32)
    q = jax.block_until_ready(qnetwork_forward(x, params, num_actions))
    q_ref = reference_forward(x, params, num_actions)
    np.testing.assert_allclose(np.asarray(q), np.asarray(q_ref),
                               rtol=1e-3, atol=1e-3)

    # Multi-tile batch (exercises the >=2-step grid + batch-padding path).
    key, kx2 = jax.random.split(key)
    x2 = jax.random.normal(kx2, (200,) + input_shape, dtype=jnp.float32)
    q2 = jax.block_until_ready(qnetwork_forward(x2, params, num_actions))
    q2_ref = reference_forward(x2, params, num_actions)
    np.testing.assert_allclose(np.asarray(q2), np.asarray(q2_ref),
                               rtol=1e-3, atol=1e-3)

    print("KERNEL_OK")
</pallas_src>

<mosaic_0001>
module attributes {stable_mosaic.version = 11 : i64} {
  func.func @_qnet_kernel(%arg0: i32, %arg1: memref<8x128xbf16, #tpu.memory_space<vmem>>, %arg2: memref<128x8xbf16, #tpu.memory_space<vmem>>, %arg3: memref<128x1xf32, #tpu.memory_space<vmem>>, %arg4: memref<128x128xbf16, #tpu.memory_space<vmem>>, %arg5: memref<128x1xf32, #tpu.memory_space<vmem>>, %arg6: memref<8x128xbf16, #tpu.memory_space<vmem>>, %arg7: memref<8x1xf32, #tpu.memory_space<vmem>>, %arg8: memref<8x128xf32, #tpu.memory_space<vmem>>) attributes {dimension_semantics = [#tpu.dimension_semantics<parallel>], iteration_bounds = array<i64: 1>, scalar_prefetch = 0 : i64, scratch_operands = 0 : i64, tpu.core_type = #tpu.core_type<tc>, window_params = [{transform_indices = @transform_0, window_bounds = array<i64: 8, 128>}, {pipeline_mode = #tpu.pipeline_mode<synchronous>, transform_indices = @transform_1, window_bounds = array<i64: 128, 8>}, {pipeline_mode = #tpu.pipeline_mode<synchronous>, transform_indices = @transform_2, window_bounds = array<i64: 128, 1>}, {pipeline_mode = #tpu.pipeline_mode<synchronous>, transform_indices = @transform_3, window_bounds = array<i64: 128, 128>}, {pipeline_mode = #tpu.pipeline_mode<synchronous>, transform_indices = @transform_4, window_bounds = array<i64: 128, 1>}, {pipeline_mode = #tpu.pipeline_mode<synchronous>, transform_indices = @transform_5, window_bounds = array<i64: 8, 128>}, {pipeline_mode = #tpu.pipeline_mode<synchronous>, transform_indices = @transform_6, window_bounds = array<i64: 8, 1>}, {transform_indices = @transform_7, window_bounds = array<i64: 8, 128>}]} {
    %c0 = arith.constant 0 : index
    %c0_0 = arith.constant 0 : index
    %0 = vector.load %arg1[%c0, %c0_0] : memref<8x128xbf16, #tpu.memory_space<vmem>>, vector<8x128xbf16>
    %c0_1 = arith.constant 0 : index
    %c0_2 = arith.constant 0 : index
    %1 = vector.load %arg2[%c0_1, %c0_2] : memref<128x8xbf16, #tpu.memory_space<vmem>>, vector<128x8xbf16>
    %cst = arith.constant dense<0.000000e+00> : vector<128x128xf32>
    %2 = tpu.matmul %1, %0, %cst {dimension_numbers = #tpu.dot_dimension_numbers<[1], [0], [0], [1], [0, 0, 1, 1], [], []>} : vector<128x8xbf16>, vector<8x128xbf16>, vector<128x128xf32> -> vector<128x128xf32>
    %c0_3 = arith.constant 0 : index
    %c0_4 = arith.constant 0 : index
    %3 = vector.load %arg3[%c0_3, %c0_4] : memref<128x1xf32, #tpu.memory_space<vmem>>, vector<128x1xf32>
    %4 = vector.broadcast %3 : vector<128x1xf32> to vector<128x128xf32>
    %5 = arith.addf %2, %4 : vector<128x128xf32>
    %cst_5 = arith.constant 0.000000e+00 : f32
    %6 = vector.broadcast %cst_5 : f32 to vector<128x128xf32>
    %7 = arith.maximumf %5, %6 : vector<128x128xf32>
    %c0_6 = arith.constant 0 : index
    %c0_7 = arith.constant 0 : index
    %8 = vector.load %arg4[%c0_6, %c0_7] : memref<128x128xbf16, #tpu.memory_space<vmem>>, vector<128x128xbf16>
    %9 = arith.truncf %7 : vector<128x128xf32> to vector<128x128xbf16>
    %cst_8 = arith.constant dense<0.000000e+00> : vector<128x128xf32>
    %10 = tpu.matmul %8, %9, %cst_8 {dimension_numbers = #tpu.dot_dimension_numbers<[1], [0], [0], [1], [0, 0, 1, 1], [], []>} : vector<128x128xbf16>, vector<128x128xbf16>, vector<128x128xf32> -> vector<128x128xf32>
    %c0_9 = arith.constant 0 : index
    %c0_10 = arith.constant 0 : index
    %11 = vector.load %arg5[%c0_9, %c0_10] : memref<128x1xf32, #tpu.memory_space<vmem>>, vector<128x1xf32>
    %12 = vector.broadcast %11 : vector<128x1xf32> to vector<128x128xf32>
    %13 = arith.addf %10, %12 : vector<128x128xf32>
    %cst_11 = arith.constant 0.000000e+00 : f32
    %14 = vector.broadcast %cst_11 : f32 to vector<128x128xf32>
    %15 = arith.maximumf %13, %14 : vector<128x128xf32>
    %c0_12 = arith.constant 0 : index
    %c0_13 = arith.constant 0 : index
    %16 = vector.load %arg6[%c0_12, %c0_13] : memref<8x128xbf16, #tpu.memory_space<vmem>>, vector<8x128xbf16>
    %17 = arith.truncf %15 : vector<128x128xf32> to vector<128x128xbf16>
    %cst_14 = arith.constant dense<0.000000e+00> : vector<8x128xf32>
    %18 = tpu.matmul %16, %17, %cst_14 {dimension_numbers = #tpu.dot_dimension_numbers<[1], [0], [0], [1], [0, 0, 1, 1], [], []>} : vector<8x128xbf16>, vector<128x128xbf16>, vector<8x128xf32> -> vector<8x128xf32>
    %c0_15 = arith.constant 0 : index
    %c0_16 = arith.constant 0 : index
    %19 = vector.load %arg7[%c0_15, %c0_16] : memref<8x1xf32, #tpu.memory_space<vmem>>, vector<8x1xf32>
    %20 = vector.broadcast %19 : vector<8x1xf32> to vector<8x128xf32>
    %21 = arith.addf %18, %20 : vector<8x128xf32>
    %c0_17 = arith.constant 0 : index
    %c0_18 = arith.constant 0 : index
    %22 = vector.load %arg8[%c0_17, %c0_18] : memref<8x128xf32, #tpu.memory_space<vmem>>, vector<8x128xf32>
    tpu.vector_store %arg8[%c0_17, %c0_18], %21 {strides = array<i32>} : memref<8x128xf32, #tpu.memory_space<vmem>>, vector<8x128xf32>,
    return
  }
  func.func @transform_0(%arg0: i32) -> (i32, i32) {
    %c0_i32 = arith.constant 0 : i32
    %c0_i32_0 = arith.constant 0 : i32
    return %c0_i32, %arg0 : i32, i32
  }
  func.func @transform_1(%arg0: i32) -> (i32, i32) {
    %c0_i32 = arith.constant 0 : i32
    %c0_i32_0 = arith.constant 0 : i32
    %c0_i32_1 = arith.constant 0 : i32
    return %c0_i32, %c0_i32_0 : i32, i32
  }
  func.func @transform_2(%arg0: i32) -> (i32, i32) {
    %c0_i32 = arith.constant 0 : i32
    %c0_i32_0 = arith.constant 0 : i32
    %c0_i32_1 = arith.constant 0 : i32
    return %c0_i32, %c0_i32_0 : i32, i32
  }
  func.func @transform_3(%arg0: i32) -> (i32, i32) {
    %c0_i32 = arith.constant 0 : i32
    %c0_i32_0 = arith.constant 0 : i32
    %c0_i32_1 = arith.constant 0 : i32
    return %c0_i32, %c0_i32_0 : i32, i32
  }
  func.func @transform_4(%arg0: i32) -> (i32, i32) {
    %c0_i32 = arith.constant 0 : i32
    %c0_i32_0 = arith.constant 0 : i32
    %c0_i32_1 = arith.constant 0 : i32
    return %c0_i32, %c0_i32_0 : i32, i32
  }
  func.func @transform_5(%arg0: i32) -> (i32, i32) {
    %c0_i32 = arith.constant 0 : i32
    %c0_i32_0 = arith.constant 0 : i32
    %c0_i32_1 = arith.constant 0 : i32
    return %c0_i32, %c0_i32_0 : i32, i32
  }
  func.func @transform_6(%arg0: i32) -> (i32, i32) {
    %c0_i32 = arith.constant 0 : i32
    %c0_i32_0 = arith.constant 0 : i32
    %c0_i32_1 = arith.constant 0 : i32
    return %c0_i32, %c0_i32_0 : i32, i32
  }
  func.func @transform_7(%arg0: i32) -> (i32, i32) {
    %c0_i32 = arith.constant 0 : i32
    %c0_i32_0 = arith.constant 0 : i32
    return %c0_i32, %arg0 : i32, i32
  }
}

</mosaic_0001>

<bundles_post_ra>
// kernel: tpu_custom_call.1
= control target key start
LH: loop header
LB: loop body
LE: loop exit
PB: predicated region body
PF: predicated region fallthrough
CT: control target
= control target key end

     0   :  { %vm206_vm0 = vcmask 1043456   ;;  %v681_v2 = vmov 0   ;;  %vm181_vm1 = vcmask 64512   ;;  %s893_s0 = inlined_call_operand.vmem [shape: bf16[8,128], index: 0, kind: input, shape index: {}]   ;;  %s894_s1 = inlined_call_operand.vmem [shape: bf16[128,8], index: 1, kind: input, shape index: {}]   ;;  %s895_s2 = inlined_call_operand.vmem [shape: f32[128,1], index: 2, kind: input, shape index: {}]   ;;  %s896_s3 = inlined_call_operand.vmem [shape: bf16[128,128], index: 3, kind: input, shape index: {}]   ;;  %s897_s4 = inlined_call_operand.vmem [shape: f32[128,1], index: 4, kind: input, shape index: {}]   ;;  %s898_s5 = inlined_call_operand.vmem [shape: bf16[8,128], index: 5, kind: input, shape index: {}]   ;;  %s899_s6 = inlined_call_operand.vmem [shape: f32[8,1], index: 6, kind: input, shape index: {}]   ;;  %s900_s7 = inlined_call_operand.hbm [shape: f32[8,128], index: 7, kind: output, shape index: {}]  }
   0x1   :  { %v59_v0 = vld [vmem:[%s895_s2 + $0x70] sm:$0xff]  ;;  %v28_v1 = vld [vmem:[%s893_s0] sm:$0xf]  ;;  %652 = vset.pattern.permute.xlu0 %v681_v2  ;;  %654 = vset.pattern.permute.xlu2 %v681_v2  ;;  %v60_v8 = vld [vmem:[%s895_s2 + $0x78] sm:$0xff] }
   0x2   :  { %v208_v3 = vsel %vm206_vm0, %v28_v1, 0  ;;  %v625_v4 = vld [vmem:[%s894_s1] sm:$0xff]  ;;  %v55_v6 = vld [vmem:[%s895_s2 + $0x50] sm:$0xff]  ;;  %133 = vperm.xlu0 %652, %v59_v0   ;;  %653 = vset.pattern.permute.xlu1 %v681_v2 }
   0x3   :  { %v57_v5 = vld [vmem:[%s895_s2 + $0x60] sm:$0xff]  ;;  %217 = vmatpush.bf16.msra.mxu0 %v208_v3  ;;  %113 = vperm.xlu2 %654, %v55_v6   ;;  %v631_v7 = vld [vmem:[%s894_s1 + $0x30] sm:$0xff] }
   0x4   :  { %123 = vperm.xlu1 %653, %v57_v5   ;;  %641 = vmatpush.bf16.msra.mxu2 %v208_v3 }
   0x6   :  { %585 = vmatmul.msk.bf16.vlgmr.msra.gmra.mxu0 %vm181_vm1, %v625_v4 }
   0x7   :  { %591 = vmatmul.msk.bf16.vlgmr.msra.gmra.mxu2 %vm181_vm1, %v631_v7 }
   0x8   :  { %12 = vsyncpa [#allocation3], 0  ;;  %v56_v9 = vld [vmem:[%s895_s2 + $0x58] sm:$0xff]  ;;  %v58_v10 = vld [vmem:[%s895_s2 + $0x68] sm:$0xff]  ;;  %s682_s24 = smov [#allocation2]  }
   0x9   :  { %v53_v11 = vld [vmem:[%s895_s2 + $0x40] sm:$0xff]  ;;  %v51_v12 = vld [vmem:[%s895_s2 + $0x30] sm:$0xff]  ;;  %v626_v13 = vld [vmem:[%s894_s1 + $0x8] sm:$0xff]  ;;  %s542_s25 = sshll.u32 %s682_s24, 4  ;;  %s543_s25 = int_to_ptr.vmem [resolvable:$true] %s542_s25 }
   0xa   :  { %138 = vperm.xlu0 %652, %v60_v8   ;;  %v54_v14 = vld [vmem:[%s895_s2 + $0x48] sm:$0xff]  ;;  %v632_v15 = vld [vmem:[%s894_s1 + $0x38] sm:$0xff]  ;;  %v49_v18 = vld [vmem:[%s895_s2 + $0x20] sm:$0xff] }
   0xb   :  { %118 = vperm.xlu2 %654, %v56_v9   ;;  %v52_v16 = vld [vmem:[%s895_s2 + $0x38] sm:$0xff]  ;;  %v50_v17 = vld [vmem:[%s895_s2 + $0x28] sm:$0xff]  ;;  %v47_v19 = vld [vmem:[%s895_s2 + $0x10] sm:$0xff] }
   0xc   :  { %128 = vperm.xlu1 %653, %v58_v10   ;;  %v45_v20 = vld [vmem:[%s895_s2] sm:$0xff]  ;;  %v627_v21 = vld [vmem:[%s894_s1 + $0x10] sm:$0xff]  ;;  %v48_v22 = vld [vmem:[%s895_s2 + $0x18] sm:$0xff] }
   0xd   :  { %v46_v23 = vld [vmem:[%s895_s2 + $0x8] sm:$0xff]  ;;  %v313_v24 = vld [vmem:[%s897_s4 + $0x70] sm:$0xff]  ;;  %v314_v25 = vld [vmem:[%s897_s4 + $0x78] sm:$0xff]  ;;  %s544_s2 = sshll.u32 %s900_s7, 4  ;;  %s545_s2 = int_to_ptr.hbm [resolvable:$true] %s544_s2 }
   0xe   :  { %v311_v26 = vld [vmem:[%s897_s4 + $0x60] sm:$0xff]  ;;  %v628_v27 = vld [vmem:[%s894_s1 + $0x18] sm:$0xff]  ;;  %v312_v28 = vld [vmem:[%s897_s4 + $0x68] sm:$0xff] }
   0xf   :  { %v309_v29 = vld [vmem:[%s897_s4 + $0x50] sm:$0xff]  ;;  %v310_v30 = vld [vmem:[%s897_s4 + $0x58] sm:$0xff]  ;;  %v308_v31 = vld [vmem:[%s897_s4 + $0x48] sm:$0xff] }
  0x10   :  { %v307_v32 = vld [vmem:[%s897_s4 + $0x40] sm:$0xff]  ;;  %v305_v33 = vld [vmem:[%s897_s4 + $0x30] sm:$0xff]  ;;  %v306_v36 = vld [vmem:[%s897_s4 + $0x38] sm:$0xff] }
  0x11   :  { %v303_v34 = vld [vmem:[%s897_s4 + $0x20] sm:$0xff]  ;;  %v304_v37 = vld [vmem:[%s897_s4 + $0x28] sm:$0xff]  ;;  %v302_v38 = vld [vmem:[%s897_s4 + $0x18] sm:$0xff] }
  0x12   :  { %103 = vperm.xlu0 %652, %v53_v11   ;;  %v629_v35 = vld [vmem:[%s894_s1 + $0x20] sm:$0xff]  ;;  %v301_v39 = vld [vmem:[%s897_s4 + $0x10] sm:$0xff]  ;;  %v630_v41 = vld [vmem:[%s894_s1 + $0x28] sm:$0xff] }
  0x13   :  { %93 = vperm.xlu2 %654, %v51_v12   ;;  %v299_v40 = vld [vmem:[%s897_s4] sm:$0xff]  ;;  %v300_v42 = vld [vmem:[%s897_s4 + $0x8] sm:$0xff] }
  0x14   :  { %108 = vperm.xlu1 %653, %v54_v14   ;;  %v517_v43 = vld [vmem:[%s899_s6] sm:$0xff] }
  0x16   :  { %586 = vmatmul.msk.bf16.gmra.mxu0 %vm181_vm1, %v626_v13 }
  0x17   :  { %592 = vmatmul.msk.bf16.gmra.mxu2 %vm181_vm1, %v632_v15 }
  0x1a   :  { %98 = vperm.xlu0 %652, %v52_v16  }
  0x1b   :  { %88 = vperm.xlu2 %654, %v50_v17  }
  0x1c   :  { %83 = vperm.xlu1 %653, %v49_v18  }
  0x22   :  { %73 = vperm.xlu0 %652, %v47_v19  }
  0x23   :  { %63 = vperm.xlu2 %654, %v45_v20  }
  0x24   :  { %78 = vperm.xlu1 %653, %v48_v22  }
  0x26   :  { %587 = vmatmul.msk.bf16.gmra.mxu0 %vm181_vm1, %v627_v21 }
  0x2a   :  { %68 = vperm.xlu0 %652, %v46_v23  }
  0x2b   :  { %392 = vperm.xlu2 %654, %v314_v25  }
  0x2c   :  { %387 = vperm.xlu1 %653, %v313_v24  }
  0x32   :  { %377 = vperm.xlu0 %652, %v311_v26  }
  0x33   :  { %367 = vperm.xlu2 %654, %v309_v29  }
  0x34   :  { %382 = vperm.xlu1 %653, %v312_v28  }
  0x36   :  { %588 = vmatmul.msk.bf16.gmra.mxu0 %vm181_vm1, %v628_v27 }
  0x3a   :  { %372 = vperm.xlu0 %652, %v310_v30  }
  0x3b   :  { %362 = vperm.xlu2 %654, %v308_v31  }
  0x3c   :  { %357 = vperm.xlu1 %653, %v307_v32  }
  0x42   :  { %347 = vperm.xlu0 %652, %v305_v33  }
  0x43   :  { %337 = vperm.xlu2 %654, %v303_v34  }
  0x44   :  { %352 = vperm.xlu1 %653, %v306_v36  }
  0x46   :  { %589 = vmatmul.msk.bf16.gmra.mxu0 %vm181_vm1, %v629_v35 }
  0x4a   :  { %342 = vperm.xlu0 %652, %v304_v37  }
  0x4b   :  { %332 = vperm.xlu2 %654, %v302_v38  }
  0x4c   :  { %327 = vperm.xlu1 %653, %v301_v39  }
  0x52   :  { %317 = vperm.xlu0 %652, %v299_v40  }
  0x53   :  { %520 = vperm.xlu2 %654, %v517_v43  }
  0x54   :  { %322 = vperm.xlu1 %653, %v300_v42  }
  0x56   :  { %590 = vmatmul.msk.bf16.gmra.mxu0 %vm181_vm1, %v630_v41 }
  0x5d   :  { %v114_v44 = vpop.permute.xlu2 %113 }
  0x65   :  { %v119_v47 = vpop.permute.xlu2 %118 }
  0x6d   :  { %v94_v51 = vpop.permute.xlu2 %93 }
  0x74   :  { %v134_v45 = vpop.permute.xlu0 %133 }
  0x75   :  { %v89_v57 = vpop.permute.xlu2 %88 }
  0x76   :  { %v124_v46 = vpop.permute.xlu1 %123 }
  0x7c   :  { %v139_v48 = vpop.permute.xlu0 %138 }
  0x7d   :  { %v64_v62 = vpop.permute.xlu2 %63 }
  0x7e   :  { %v129_v49 = vpop.permute.xlu1 %128 }
  0x83   :  { %v219_v50 = vpop.f32.mrf.mxu0 }
  0x84   :  { %v104_v52 = vpop.permute.xlu0 %103  ;;  %v220_v3 = vadd.f32 %v219_v50, %v64_v62 }
  0x86   :  { %v109_v53 = vpop.permute.xlu1 %108  ;;  %v259_v9 = vmax.f32 %v220_v3, 0.0 }
  0x8a   :  { %v249_v55 = vpop.f32.mrf.mxu2 }
  0x8b   :  { %v221_v54 = vpop.f32.mrf.mxu0  ;;  %v250_v13 = vadd.f32 %v249_v55, %v124_v46  ;;  %v638_v55 = vld [vmem:[%s896_s3 + $0x28] sm:$0xff] }
  0x8c   :  { %v99_v56 = vpop.permute.xlu0 %98 }
  0x8d   :  { %v271_v20 = vmax.f32 %v250_v13, 0.0 }
  0x8e   :  { %v84_v58 = vpop.permute.xlu1 %83 }
  0x92   :  { %v251_v60 = vpop.f32.mrf.mxu2 }
  0x93   :  { %v224_v59 = vpop.f32.mrf.mxu0  ;;  %v252_v14 = vadd.f32 %v251_v60, %v129_v49 }
  0x94   :  { %v74_v61 = vpop.permute.xlu0 %73 }
  0x95   :  { %v225_v0 = vadd.f32 %v224_v59, %v74_v61  ;;  %v272_v21 = vmax.f32 %v252_v14, 0.0  ;;  %v640_v59 = vld [vmem:[%s896_s3 + $0x38] sm:$0xff] }
  0x96   :  { %v79_v63 = vpop.permute.xlu1 %78 }
  0x97   :  { %v261_v6 = vmax.f32 %v225_v0, 0.0  ;;  %v297_v24 = vpack.c.bf16 %v272_v21, %v271_v20 }
  0x9a   :  { %v254_v2 = vpop.f32.mrf.mxu2 }
  0x9b   :  { %v226_v1 = vpop.f32.mrf.mxu0  ;;  %v255_v11 = vadd.f32 %v254_v2, %v134_v45 }
  0x9c   :  { %v227_v4 = vadd.f32 %v226_v1, %v79_v63  ;;  %v69_v5 = vpop.permute.xlu0 %68 }
  0x9d   :  { %v222_v8 = vadd.f32 %v221_v54, %v69_v5  ;;  %v273_v18 = vmax.f32 %v255_v11, 0.0  ;;  %v634_v54 = vld [vmem:[%s896_s3 + $0x8] sm:$0xff] }
  0x9e   :  { %v262_v7 = vmax.f32 %v227_v4, 0.0  ;;  %v388_v4 = vpop.permute.xlu1 %387 }
  0x9f   :  { %v260_v10 = vmax.f32 %v222_v8, 0.0 }
  0xa0   :  { %v292_v12 = vpack.c.bf16 %v262_v7, %v261_v6  ;;  %v393_v6 = vpop.permute.xlu2 %392 }
  0xa1   :  { %v291_v15 = vpack.c.bf16 %v260_v10, %v259_v9 }
  0xa2   :  { %v256_v17 = vpop.f32.mrf.mxu2 }
  0xa3   :  { %v229_v16 = vpop.f32.mrf.mxu0  ;;  %v257_v19 = vadd.f32 %v256_v17, %v139_v48 }
  0xa4   :  { %v230_v48 = vadd.f32 %v229_v16, %v84_v58  ;;  %v636_v58 = vld [vmem:[%s896_s3 + $0x18] sm:$0xff]  ;;  %v378_v10 = vpop.permute.xlu0 %377 }
  0xa5   :  { %v274_v22 = vmax.f32 %v257_v19, 0.0 }
  0xa6   :  { %v383_v8 = vpop.permute.xlu1 %382 }
  0xa7   :  { %v298_v23 = vpack.c.bf16 %v274_v22, %v273_v18 }
  0xa8   :  { %v368_v11 = vpop.permute.xlu2 %367 }
  0xa9   :  { %443 = vmatpush.bf16.msra.mxu1 %v298_v23  ;;  %642 = vmatpush.bf16.msra.mxu3 %v298_v23 }
  0xab   :  { %v231_v25 = vpop.f32.mrf.mxu0 }
  0xac   :  { %v232_v43 = vadd.f32 %v231_v25, %v89_v57  ;;  %v639_v57 = vld [vmem:[%s896_s3 + $0x30] sm:$0xff] }
  0xad   :  { %444 = vmatpush.bf16.msra.mxu1 %v297_v24  ;;  %643 = vmatpush.bf16.msra.mxu3 %v297_v24 }
  0xae   :  { %v358_v14 = vpop.permute.xlu1 %357 }
  0xb0   :  { %v363_v16 = vpop.permute.xlu2 %362 }
  0xb3   :  { %v234_v26 = vpop.f32.mrf.mxu0 }
  0xb4   :  { %v235_v41 = vadd.f32 %v234_v26, %v94_v51  ;;  %v633_v51 = vld [vmem:[%s896_s3] sm:$0xff] }
  0xb6   :  { %v265_v49 = vmax.f32 %v235_v41, 0.0  ;;  %v353_v25 = vpop.permute.xlu1 %352 }
  0xbb   :  { %v236_v27 = vpop.f32.mrf.mxu0 }
  0xbc   :  { %v237_v38 = vadd.f32 %v236_v27, %v99_v56  ;;  %v635_v56 = vld [vmem:[%s896_s3 + $0x10] sm:$0xff] }
  0xbe   :  { %v266_v45 = vmax.f32 %v237_v38, 0.0 }
  0xc0   :  { %v294_v50 = vpack.c.bf16 %v266_v45, %v265_v49 }
  0xc3   :  { %v239_v28 = vpop.f32.mrf.mxu0 }
  0xc4   :  { %v240_v35 = vadd.f32 %v239_v28, %v104_v52 }
  0xc6   :  { %v267_v42 = vmax.f32 %v240_v35, 0.0  ;;  %v338_v35 = vpop.permute.xlu2 %337 }
  0xcb   :  { %v241_v29 = vpop.f32.mrf.mxu0 }
  0xcc   :  { %v242_v33 = vadd.f32 %v241_v29, %v109_v53  ;;  %v637_v53 = vld [vmem:[%s896_s3 + $0x20] sm:$0xff] }
  0xce   :  { %v268_v39 = vmax.f32 %v242_v33, 0.0 }
  0xd0   :  { %v295_v46 = vpack.c.bf16 %v268_v39, %v267_v42  ;;  %v328_v42 = vpop.permute.xlu1 %327 }
  0xd3   :  { %v244_v30 = vpop.f32.mrf.mxu0 }
  0xd4   :  { %v245_v31 = vadd.f32 %v244_v30, %v114_v44  ;;  %v264_v44 = vmax.f32 %v232_v43, 0.0 }
  0xd6   :  { %v269_v36 = vmax.f32 %v245_v31, 0.0 }
  0xdb   :  { %v246_v32 = vpop.f32.mrf.mxu0 }
  0xdc   :  { %v247_v34 = vadd.f32 %v246_v32, %v119_v47  ;;  %v263_v47 = vmax.f32 %v230_v48, 0.0 }
  0xde   :  { %v270_v37 = vmax.f32 %v247_v34, 0.0  ;;  %v293_v52 = vpack.c.bf16 %v264_v44, %v263_v47 }
  0xe0   :  { %v296_v40 = vpack.c.bf16 %v270_v37, %v269_v36 }
  0xe2   :  { %445 = vmatpush.bf16.msra.mxu1 %v296_v40  ;;  %644 = vmatpush.bf16.msra.mxu3 %v296_v40 }
  0xe6   :  { %446 = vmatpush.bf16.msra.mxu1 %v295_v46  ;;  %645 = vmatpush.bf16.msra.mxu3 %v295_v46 }
  0xea   :  { %447 = vmatpush.bf16.msra.mxu1 %v294_v50  ;;  %646 = vmatpush.bf16.msra.mxu3 %v294_v50 }
  0xee   :  { %448 = vmatpush.bf16.msra.mxu1 %v293_v52  ;;  %647 = vmatpush.bf16.msra.mxu3 %v293_v52  ;;  %v333_v52 = vpop.permute.xlu2 %332 }
  0xf2   :  { %449 = vmatpush.bf16.msra.mxu1 %v292_v12  ;;  %648 = vmatpush.bf16.msra.mxu3 %v292_v12 }
  0xf6   :  { %450 = vmatpush.bf16.msra.mxu1 %v291_v15  ;;  %649 = vmatpush.bf16.msra.mxu3 %v291_v15  ;;  %v373_v15 = vpop.permute.xlu0 %372 }
  0xf9   :  { %451 = vmatmul.bf16.vlgmr.msra.gmra.mxu1 %v633_v51  ;;  %471 = vmatmul.bf16.vlgmr.msra.gmra.mxu3 %v637_v53 }
  0xfe   :  { %v348_v29 = vpop.permute.xlu0 %347 }
 0x106   :  { %v343_v46 = vpop.permute.xlu0 %342 }
 0x109   :  { %456 = vmatmul.bf16.gmra.mxu1 %v634_v54  ;;  %476 = vmatmul.bf16.gmra.mxu3 %v638_v55 }
 0x119   :  { %461 = vmatmul.bf16.gmra.mxu1 %v635_v56  ;;  %481 = vmatmul.bf16.gmra.mxu3 %v639_v57  ;;  %v323_v57 = vpop.permute.xlu1 %322 }
 0x129   :  { %466 = vmatmul.bf16.gmra.mxu1 %v636_v58  ;;  %486 = vmatmul.bf16.gmra.mxu3 %v640_v59 }
 0x176   :  { %v881_v60 = vpop.f32.mrf.mxu1 }
 0x17c   :  { %v472_v61 = vpop.f32.mrf.mxu3 }
 0x17d   :  { %v473_v37 = vadd.f32 %v472_v61, %v358_v14 }
 0x17e   :  { %v883_v62 = vpop.f32.mrf.mxu1 }
 0x17f   :  { %v500_v43 = vmax.f32 %v473_v37, 0.0  ;;  %v455_v58 = vadd.f32 %v883_v62, %v323_v57 }
 0x184   :  { %v474_v63 = vpop.f32.mrf.mxu3 }
 0x185   :  { %v475_v32 = vadd.f32 %v474_v63, %v363_v16  ;;  %v318_v63 = vpop.permute.xlu0 %317 }
 0x186   :  { %v457_v0 = vpop.f32.mrf.mxu1 }
 0x187   :  { %v501_v39 = vmax.f32 %v475_v32, 0.0  ;;  %v458_v55 = vadd.f32 %v457_v0, %v328_v42  ;;  %v508_v0 = vld [vmem:[%s898_s5] sm:$0xf] }
 0x189   :  { %v513_v44 = vpack.c.bf16 %v501_v39, %v500_v43 }
 0x18c   :  { %v477_v1 = vpop.f32.mrf.mxu3 }
 0x18d   :  { %v478_v30 = vadd.f32 %v477_v1, %v368_v11  ;;  %v453_v1 = vadd.f32 %v881_v60, %v318_v63  ;;  %v521_v60 = vpop.permute.xlu2 %520 }
 0x18e   :  { %v459_v3 = vpop.f32.mrf.mxu1 }
 0x18f   :  { %v502_v38 = vmax.f32 %v478_v30, 0.0  ;;  %v460_v51 = vadd.f32 %v459_v3, %v333_v52 }
 0x191   :  { %v495_v59 = vmax.f32 %v460_v51, 0.0 }
 0x194   :  { %v479_v2 = vpop.f32.mrf.mxu3 }
 0x195   :  { %v480_v26 = vadd.f32 %v479_v2, %v373_v15  ;;  %v494_v2 = vmax.f32 %v458_v55, 0.0 }
 0x196   :  { %v462_v7 = vpop.f32.mrf.mxu1 }
 0x197   :  { %v503_v33 = vmax.f32 %v480_v26, 0.0  ;;  %v463_v50 = vadd.f32 %v462_v7, %v338_v35 }
 0x199   :  { %v514_v41 = vpack.c.bf16 %v503_v33, %v502_v38  ;;  %v496_v56 = vmax.f32 %v463_v50, 0.0 }
 0x19c   :  { %v482_v5 = vpop.f32.mrf.mxu3 }
 0x19d   :  { %v483_v22 = vadd.f32 %v482_v5, %v378_v10  ;;  %v510_v5 = vpack.c.bf16 %v495_v59, %v494_v2 }
 0x19e   :  { %v464_v12 = vpop.f32.mrf.mxu1 }
 0x19f   :  { %v504_v31 = vmax.f32 %v483_v22, 0.0  ;;  %v465_v48 = vadd.f32 %v464_v12, %v343_v46 }
 0x1a1   :  { %v497_v53 = vmax.f32 %v465_v48, 0.0 }
 0x1a3   :  { %v511_v61 = vpack.c.bf16 %v497_v53, %v496_v56 }
 0x1a4   :  { %v484_v9 = vpop.f32.mrf.mxu3 }
 0x1a5   :  { %v485_v20 = vadd.f32 %v484_v9, %v383_v8 }
 0x1a6   :  { %v467_v18 = vpop.f32.mrf.mxu1 }
 0x1a7   :  { %v505_v27 = vmax.f32 %v485_v20, 0.0  ;;  %v468_v45 = vadd.f32 %v467_v18, %v348_v29 }
 0x1a9   :  { %v515_v34 = vpack.c.bf16 %v505_v27, %v504_v31  ;;  %v498_v47 = vmax.f32 %v468_v45, 0.0 }
 0x1ac   :  { %v487_v13 = vpop.f32.mrf.mxu3 }
 0x1ad   :  { %v488_v17 = vadd.f32 %v487_v13, %v388_v4  ;;  %v493_v4 = vmax.f32 %v455_v58, 0.0 }
 0x1ae   :  { %v469_v36 = vpop.f32.mrf.mxu1 }
 0x1af   :  { %v506_v23 = vmax.f32 %v488_v17, 0.0  ;;  %v470_v40 = vadd.f32 %v469_v36, %v353_v25 }
 0x1b1   :  { %v499_v49 = vmax.f32 %v470_v40, 0.0 }
 0x1b3   :  { %v512_v54 = vpack.c.bf16 %v499_v49, %v498_v47 }
 0x1b4   :  { %v489_v19 = vpop.f32.mrf.mxu3 }
 0x1b5   :  { %v490_v21 = vadd.f32 %v489_v19, %v393_v6  ;;  %v492_v6 = vmax.f32 %v453_v1, 0.0 }
 0x1b7   :  { %v507_v24 = vmax.f32 %v490_v21, 0.0  ;;  %v509_v3 = vpack.c.bf16 %v493_v4, %v492_v6 }
 0x1b9   :  { %v516_v28 = vpack.c.bf16 %v507_v24, %v506_v23 }
 0x1bb   :  { %523 = vmatpush.bf16.msrb.mxu2 %v516_v28 }
 0x1bf   :  { %524 = vmatpush.bf16.msrb.mxu2 %v515_v34 }
 0x1c3   :  { %525 = vmatpush.bf16.msrb.mxu2 %v514_v41 }
 0x1c7   :  { %526 = vmatpush.bf16.msrb.mxu2 %v513_v44 }
 0x1cb   :  { %527 = vmatpush.bf16.msrb.mxu2 %v512_v54 }
 0x1cf   :  { %528 = vmatpush.bf16.msrb.mxu2 %v511_v61 }
 0x1d3   :  { %529 = vmatpush.bf16.msrb.mxu2 %v510_v5 }
 0x1d7   :  { %530 = vmatpush.bf16.msrb.mxu2 %v509_v3 }
 0x1da   :  { %531 = vmatmul.bf16.vlgmr.msrb.gmra.mxu2 %v508_v0 }
 0x25d   :  { %v532_v62 = vpop.f32.mrf.mxu2 }
 0x25e   :  { %v533_v7 = vadd.f32 %v532_v62, %v521_v60 }
 0x260   :  { %536 = vst [vmem:[#allocation2] sm:$0xff] %v533_v7 }
 0x261   :  { %547 = dma.vmem_to_hbm [thread:$0]  %s543_s25, 128, %s545_s2, [#allocation3]  }
 0x265   :  { %v534_v8 = vpop.f32.mrf.mxu2 }
 0x266   :  { %679 = dma.done.wait [#allocation3], 128  }
 0x267   :  { %680 = vsyncadd [#allocation3], 4294967168 }
 0x268   :  { %552 = vsyncpa [#allocation3], 1 }

</bundles_post_ra>
